<compile_context>
chip_gen: v5e
topology: v5e:2x2
jax: 0.10.0
libtpu: 0.0.40
codegen_flags: <defaults>
</compile_context>

<pallas_src>
import functools

import jax
import jax.numpy as jnp
from jax import lax
from jax.experimental import pallas as pl
from jax.experimental.pallas import tpu as pltpu


PAD = 128       # lane-dense feature width for every layer
N_LAYERS = 4    # layer0a, layer0b, layer0c, out_layer


# ----------------------------------------------------------------------------
# Kernel: whole forward pass for one (small) batch, everything resident in VMEM.
#   x_ref   : (B, 128)   f32   zero-padded input features (native f32 tile)
#   w_ref   : (512, 128) bf16  stacked zero-padded weights, (in, out) per layer:
#             rows   0..127 = w0a, 128..255 = w0b, 256..383 = w0c, 384..511 = wout
#   vec_ref : (16, 128)  f32   packed per-layer vectors:
#             rows 0..2 = b0a,g0a,be0a | 3..5 = b0b,g0b,be0b | 6..8 = b0c,g0c,be0c
#             row  9    = bout          (rows 10..15 zero padding)
#   o_ref   : (B, 128)   f32   lane-dense output (valid cols sliced in wrapper)
# ----------------------------------------------------------------------------
def _ff_attention_kernel(x_ref, w_ref, vec_ref, o_ref):
    eps = jnp.float32(1e-5)      # torch.nn.BatchNorm1d default eps
    slope = jnp.float32(0.01)    # F.leaky_relu default negative_slope

    def lrelu(h):
        return jnp.maximum(h, slope * h)

    def linear_lrelu_bn(h_bf16, layer, r0):
        w = w_ref[layer * PAD:(layer + 1) * PAD, :]        # static ref slice, free
        b = vec_ref[r0:r0 + 1, :]                          # (1,128) single-row loads
        g = vec_ref[r0 + 1:r0 + 2, :]
        be = vec_ref[r0 + 2:r0 + 3, :]
        # Linear on the MXU (bf16 operands, f32 accumulation) + bias + LeakyReLU.
        h = jnp.dot(h_bf16, w, preferred_element_type=jnp.float32)
        h = lrelu(h + b)
        # BatchNorm1d, training-mode batch statistics, two-pass (subtract-mean)
        # variance; affine folded:  (h - mean) * (g * rsqrt(var+eps)) + beta.
        mean = jnp.mean(h, axis=0, keepdims=True)          # (1, 128)
        centered = h - mean
        var = jnp.mean(centered * centered, axis=0, keepdims=True)
        scale = g * lax.rsqrt(var + eps)                   # rsqrt -> EUP slot
        return centered * scale + be                        # f32

    x = x_ref[...].astype(jnp.bfloat16)                     # single VPU cast
    h = linear_lrelu_bn(x, 0, 0)
    # (dropout0a skipped — eval-mode identity, see TODO above)
    h = linear_lrelu_bn(h.astype(jnp.bfloat16), 1, 3)
    # (dropout0b skipped)
    h = linear_lrelu_bn(h.astype(jnp.bfloat16), 2, 6)

    # Output layer + leaky_relu (lane-dense 128-wide, unmasked store)
    wout = w_ref[3 * PAD:4 * PAD, :]
    y = jnp.dot(h.astype(jnp.bfloat16), wout,
                preferred_element_type=jnp.float32)
    o_ref[...] = lrelu(y + vec_ref[9:10, :])


# ----------------------------------------------------------------------------
# One-time packing of constants (outside the per-call path).
# ----------------------------------------------------------------------------
def _pad2(a, rows, cols):
    out = jnp.zeros((rows, cols), a.dtype)
    return out.at[:a.shape[0], :a.shape[1]].set(a)


def prepare_packed_params(params):
    """Pad + pack all constant operands once. Returns (w_stack, vecs)."""
    w_stack = jnp.concatenate(
        [
            _pad2(params["w0a"], PAD, PAD),
            _pad2(params["w0b"], PAD, PAD),
            _pad2(params["w0c"], PAD, PAD),
            _pad2(params["wout"], PAD, PAD),
        ],
        axis=0,
    )  # (512, 128) bf16

    def rowpad(v):
        return _pad2(v.reshape(1, -1).astype(jnp.float32), 1, PAD)

    vecs = jnp.concatenate(
        [
            rowpad(params["b0a"]), rowpad(params["g0a"]), rowpad(params["be0a"]),
            rowpad(params["b0b"]), rowpad(params["g0b"]), rowpad(params["be0b"]),
            rowpad(params["b0c"]), rowpad(params["g0c"]), rowpad(params["be0c"]),
            rowpad(params["bout"]),
            jnp.zeros((6, PAD), jnp.float32),
        ],
        axis=0,
    )  # (16, 128)

    assert w_stack.shape == (N_LAYERS * PAD, PAD) and w_stack.dtype == jnp.bfloat16
    assert vecs.shape == (16, PAD) and vecs.dtype == jnp.float32
    # Padding-inertness invariant: gamma/beta rows are zero beyond `hidden`
    # columns by construction (_pad2 fills with zeros), so scale=0 on padded
    # lanes and they remain exactly 0 through every layer.
    return w_stack, vecs


# ----------------------------------------------------------------------------
# Jitted forward: only pads x, calls the kernel once, slices valid columns.
# ----------------------------------------------------------------------------
@functools.partial(jax.jit, static_argnames=("d_out",))
def ff_attention_forward(x, w_stack, vecs, *, d_out):
    """x: (B, D_in) float32. w_stack/vecs: packed constants from prepare_packed_params."""
    B, d_in = x.shape
    # Keep x in f32: (B,128) f32 is a native tile; cast to bf16 inside the kernel.
    x_p = jnp.zeros((B, PAD), jnp.float32).at[:, :d_in].set(x)

    vmem = pl.BlockSpec(memory_space=pltpu.MemorySpace.VMEM)
    y_pad = pl.pallas_call(
        _ff_attention_kernel,
        out_shape=jax.ShapeDtypeStruct((B, PAD), jnp.float32),
        in_specs=[vmem, vmem, vmem],
        out_specs=vmem,
        compiler_params=pltpu.CompilerParams(vmem_limit_bytes=8 << 20),
    )(x_p, w_stack, vecs)

    return y_pad[:, :d_out]


# ----------------------------------------------------------------------------
# Deterministic parameter init (mirrors torch defaults / xavier_uniform_).
# Weights stored transposed vs. PyTorch, i.e. (in_dim, out_dim), in bf16.
# ----------------------------------------------------------------------------
def _xavier_uniform(key, fan_in, fan_out):
    bound = jnp.sqrt(6.0 / (fan_in + fan_out))
    w = jax.random.uniform(key, (fan_in, fan_out), jnp.float32, -bound, bound)
    return w.astype(jnp.bfloat16)


def _kaiming_uniform_a5(key, fan_in, fan_out):
    # torch default Linear weight init: kaiming_uniform_(a=sqrt(5))
    bound = 1.0 / jnp.sqrt(float(fan_in))
    w = jax.random.uniform(key, (fan_in, fan_out), jnp.float32, -bound, bound)
    return w.astype(jnp.bfloat16)


def _torch_linear_bias(key, fan_in, fan_out):
    bound = 1.0 / jnp.sqrt(float(fan_in))
    return jax.random.uniform(key, (1, fan_out), jnp.float32, -bound, bound)


def init_params(key, d_in, hidden, d_out):
    ks = jax.random.split(key, 8)
    return {
        "w0a": _xavier_uniform(ks[0], d_in, hidden),
        "b0a": _torch_linear_bias(ks[1], d_in, hidden),
        "g0a": jnp.ones((1, hidden), jnp.float32),
        "be0a": jnp.zeros((1, hidden), jnp.float32),
        "w0b": _xavier_uniform(ks[2], hidden, hidden),
        "b0b": _torch_linear_bias(ks[3], hidden, hidden),
        "g0b": jnp.ones((1, hidden), jnp.float32),
        "be0b": jnp.zeros((1, hidden), jnp.float32),
        "w0c": _xavier_uniform(ks[4], hidden, hidden),
        "b0c": _torch_linear_bias(ks[5], hidden, hidden),
        "g0c": jnp.ones((1, hidden), jnp.float32),
        "be0c": jnp.zeros((1, hidden), jnp.float32),
        "wout": _kaiming_uniform_a5(ks[6], hidden, d_out),
        "bout": _torch_linear_bias(ks[7], hidden, d_out),
    }


# ----------------------------------------------------------------------------
# Pure-JAX reference (same math incl. bf16 matmul operands) for a sanity check
# ----------------------------------------------------------------------------
def ff_attention_ref(x, p):
    eps, slope = 1e-5, 0.01

    def lrelu(h):
        return jnp.maximum(h, slope * h)

    def blk(h, w, b, g, be):
        h = jnp.dot(h.astype(jnp.bfloat16), w,
                    preferred_element_type=jnp.float32)
        h = lrelu(h + b)
        m = jnp.mean(h, axis=0, keepdims=True)
        c = h - m
        var = jnp.mean(c * c, axis=0, keepdims=True)
        return c * (g / jnp.sqrt(var + eps)) + be

    h = blk(x, p["w0a"], p["b0a"], p["g0a"], p["be0a"])
    h = blk(h, p["w0b"], p["b0b"], p["g0b"], p["be0b"])
    h = blk(h, p["w0c"], p["b0c"], p["g0c"], p["be0c"])
    y = jnp.dot(h.astype(jnp.bfloat16), p["wout"],
                preferred_element_type=jnp.float32)
    return lrelu(y + p["bout"])


if __name__ == "__main__":
    BATCH, D_IN, HIDDEN, D_OUT = 8, 16, 32, 4

    key = jax.random.PRNGKey(0)
    kx, kp = jax.random.split(key)
    x = jax.random.normal(kx, (BATCH, D_IN), jnp.float32)
    params = init_params(kp, D_IN, HIDDEN, D_OUT)

    # One-time constant packing (hoisted out of the forward path).
    w_stack, vecs = prepare_packed_params(params)

    out = ff_attention_forward(x, w_stack, vecs, d_out=D_OUT)
    out = jax.block_until_ready(out)

    ref = ff_attention_ref(x, params)
    assert out.shape == (BATCH, D_OUT)
    assert jnp.allclose(out, ref, atol=2e-3, rtol=2e-3), "mismatch vs. JAX reference"

    print("KERNEL_OK")
</pallas_src>

<mosaic_0001>
module attributes {stable_mosaic.version = 11 : i64} {
  func.func @_ff_attention_kernel(%arg0: memref<8x128xf32, #tpu.memory_space<vmem>>, %arg1: memref<512x128xbf16, #tpu.memory_space<vmem>>, %arg2: memref<16x128xf32, #tpu.memory_space<vmem>>, %arg3: memref<8x128xf32, #tpu.memory_space<vmem>>) attributes {dimension_semantics = [], scalar_prefetch = 0 : i64, scratch_operands = 0 : i64, tpu.core_type = #tpu.core_type<tc>} {
    %c0 = arith.constant 0 : index
    %c0_0 = arith.constant 0 : index
    %0 = vector.load %arg0[%c0, %c0_0] : memref<8x128xf32, #tpu.memory_space<vmem>>, vector<8x128xf32>
    %1 = arith.truncf %0 : vector<8x128xf32> to vector<8x128xbf16>
    %c0_1 = arith.constant 0 : index
    %c0_2 = arith.constant 0 : index
    %2 = vector.load %arg1[%c0_1, %c0_2] : memref<512x128xbf16, #tpu.memory_space<vmem>>, vector<128x128xbf16>
    %c0_3 = arith.constant 0 : index
    %c0_4 = arith.constant 0 : index
    %3 = vector.load %arg2[%c0_3, %c0_4] : memref<16x128xf32, #tpu.memory_space<vmem>>, vector<1x128xf32>
    %c1 = arith.constant 1 : index
    %c0_5 = arith.constant 0 : index
    %4 = vector.load %arg2[%c1, %c0_5] : memref<16x128xf32, #tpu.memory_space<vmem>>, vector<1x128xf32>
    %c2 = arith.constant 2 : index
    %c0_6 = arith.constant 0 : index
    %5 = vector.load %arg2[%c2, %c0_6] : memref<16x128xf32, #tpu.memory_space<vmem>>, vector<1x128xf32>
    %cst = arith.constant dense<0.000000e+00> : vector<8x128xf32>
    %6 = tpu.matmul %1, %2, %cst {dimension_numbers = #tpu.dot_dimension_numbers<[1], [0], [0], [1], [0, 0, 1, 1], [], []>} : vector<8x128xbf16>, vector<128x128xbf16>, vector<8x128xf32> -> vector<8x128xf32>
    %7 = vector.broadcast %3 : vector<1x128xf32> to vector<8x128xf32>
    %8 = arith.addf %6, %7 : vector<8x128xf32>
    %cst_7 = arith.constant 0.00999999977 : f32
    %9 = vector.broadcast %cst_7 : f32 to vector<8x128xf32>
    %10 = arith.mulf %9, %8 : vector<8x128xf32>
    %11 = arith.maximumf %8, %10 : vector<8x128xf32>
    %cst_8 = arith.constant dense<0.000000e+00> : vector<128xf32>
    %12 = vector.multi_reduction <add>, %11, %cst_8 [0] : vector<8x128xf32> to vector<128xf32>
    %13 = vector.shape_cast %12 : vector<128xf32> to vector<1x128xf32>
    %cst_9 = arith.constant 8.000000e+00 : f32
    %14 = vector.broadcast %cst_9 : f32 to vector<1x128xf32>
    %15 = arith.divf %13, %14 : vector<1x128xf32>
    %16 = vector.broadcast %15 : vector<1x128xf32> to vector<8x128xf32>
    %17 = arith.subf %11, %16 : vector<8x128xf32>
    %18 = arith.mulf %17, %17 : vector<8x128xf32>
    %cst_10 = arith.constant dense<0.000000e+00> : vector<128xf32>
    %19 = vector.multi_reduction <add>, %18, %cst_10 [0] : vector<8x128xf32> to vector<128xf32>
    %20 = vector.shape_cast %19 : vector<128xf32> to vector<1x128xf32>
    %cst_11 = arith.constant 8.000000e+00 : f32
    %21 = vector.broadcast %cst_11 : f32 to vector<1x128xf32>
    %22 = arith.divf %20, %21 : vector<1x128xf32>
    %cst_12 = arith.constant 9.99999974E-6 : f32
    %23 = vector.broadcast %cst_12 : f32 to vector<1x128xf32>
    %24 = arith.addf %22, %23 : vector<1x128xf32>
    %25 = math.rsqrt %24 : vector<1x128xf32>
    %26 = arith.mulf %4, %25 : vector<1x128xf32>
    %27 = vector.broadcast %26 : vector<1x128xf32> to vector<8x128xf32>
    %28 = arith.mulf %17, %27 : vector<8x128xf32>
    %29 = vector.broadcast %5 : vector<1x128xf32> to vector<8x128xf32>
    %30 = arith.addf %28, %29 : vector<8x128xf32>
    %31 = arith.truncf %30 : vector<8x128xf32> to vector<8x128xbf16>
    %c128 = arith.constant 128 : index
    %c0_13 = arith.constant 0 : index
    %32 = vector.load %arg1[%c128, %c0_13] : memref<512x128xbf16, #tpu.memory_space<vmem>>, vector<128x128xbf16>
    %c3 = arith.constant 3 : index
    %c0_14 = arith.constant 0 : index
    %33 = vector.load %arg2[%c3, %c0_14] : memref<16x128xf32, #tpu.memory_space<vmem>>, vector<1x128xf32>
    %c4 = arith.constant 4 : index
    %c0_15 = arith.constant 0 : index
    %34 = vector.load %arg2[%c4, %c0_15] : memref<16x128xf32, #tpu.memory_space<vmem>>, vector<1x128xf32>
    %c5 = arith.constant 5 : index
    %c0_16 = arith.constant 0 : index
    %35 = vector.load %arg2[%c5, %c0_16] : memref<16x128xf32, #tpu.memory_space<vmem>>, vector<1x128xf32>
    %cst_17 = arith.constant dense<0.000000e+00> : vector<8x128xf32>
    %36 = tpu.matmul %31, %32, %cst_17 {dimension_numbers = #tpu.dot_dimension_numbers<[1], [0], [0], [1], [0, 0, 1, 1], [], []>} : vector<8x128xbf16>, vector<128x128xbf16>, vector<8x128xf32> -> vector<8x128xf32>
    %37 = vector.broadcast %33 : vector<1x128xf32> to vector<8x128xf32>
    %38 = arith.addf %36, %37 : vector<8x128xf32>
    %cst_18 = arith.constant 0.00999999977 : f32
    %39 = vector.broadcast %cst_18 : f32 to vector<8x128xf32>
    %40 = arith.mulf %39, %38 : vector<8x128xf32>
    %41 = arith.maximumf %38, %40 : vector<8x128xf32>
    %cst_19 = arith.constant dense<0.000000e+00> : vector<128xf32>
    %42 = vector.multi_reduction <add>, %41, %cst_19 [0] : vector<8x128xf32> to vector<128xf32>
    %43 = vector.shape_cast %42 : vector<128xf32> to vector<1x128xf32>
    %cst_20 = arith.constant 8.000000e+00 : f32
    %44 = vector.broadcast %cst_20 : f32 to vector<1x128xf32>
    %45 = arith.divf %43, %44 : vector<1x128xf32>
    %46 = vector.broadcast %45 : vector<1x128xf32> to vector<8x128xf32>
    %47 = arith.subf %41, %46 : vector<8x128xf32>
    %48 = arith.mulf %47, %47 : vector<8x128xf32>
    %cst_21 = arith.constant dense<0.000000e+00> : vector<128xf32>
    %49 = vector.multi_reduction <add>, %48, %cst_21 [0] : vector<8x128xf32> to vector<128xf32>
    %50 = vector.shape_cast %49 : vector<128xf32> to vector<1x128xf32>
    %cst_22 = arith.constant 8.000000e+00 : f32
    %51 = vector.broadcast %cst_22 : f32 to vector<1x128xf32>
    %52 = arith.divf %50, %51 : vector<1x128xf32>
    %cst_23 = arith.constant 9.99999974E-6 : f32
    %53 = vector.broadcast %cst_23 : f32 to vector<1x128xf32>
    %54 = arith.addf %52, %53 : vector<1x128xf32>
    %55 = math.rsqrt %54 : vector<1x128xf32>
    %56 = arith.mulf %34, %55 : vector<1x128xf32>
    %57 = vector.broadcast %56 : vector<1x128xf32> to vector<8x128xf32>
    %58 = arith.mulf %47, %57 : vector<8x128xf32>
    %59 = vector.broadcast %35 : vector<1x128xf32> to vector<8x128xf32>
    %60 = arith.addf %58, %59 : vector<8x128xf32>
    %61 = arith.truncf %60 : vector<8x128xf32> to vector<8x128xbf16>
    %c256 = arith.constant 256 : index
    %c0_24 = arith.constant 0 : index
    %62 = vector.load %arg1[%c256, %c0_24] : memref<512x128xbf16, #tpu.memory_space<vmem>>, vector<128x128xbf16>
    %c6 = arith.constant 6 : index
    %c0_25 = arith.constant 0 : index
    %63 = vector.load %arg2[%c6, %c0_25] : memref<16x128xf32, #tpu.memory_space<vmem>>, vector<1x128xf32>
    %c7 = arith.constant 7 : index
    %c0_26 = arith.constant 0 : index
    %64 = vector.load %arg2[%c7, %c0_26] : memref<16x128xf32, #tpu.memory_space<vmem>>, vector<1x128xf32>
    %c8 = arith.constant 8 : index
    %c0_27 = arith.constant 0 : index
    %65 = vector.load %arg2[%c8, %c0_27] : memref<16x128xf32, #tpu.memory_space<vmem>>, vector<1x128xf32>
    %cst_28 = arith.constant dense<0.000000e+00> : vector<8x128xf32>
    %66 = tpu.matmul %61, %62, %cst_28 {dimension_numbers = #tpu.dot_dimension_numbers<[1], [0], [0], [1], [0, 0, 1, 1], [], []>} : vector<8x128xbf16>, vector<128x128xbf16>, vector<8x128xf32> -> vector<8x128xf32>
    %67 = vector.broadcast %63 : vector<1x128xf32> to vector<8x128xf32>
    %68 = arith.addf %66, %67 : vector<8x128xf32>
    %cst_29 = arith.constant 0.00999999977 : f32
    %69 = vector.broadcast %cst_29 : f32 to vector<8x128xf32>
    %70 = arith.mulf %69, %68 : vector<8x128xf32>
    %71 = arith.maximumf %68, %70 : vector<8x128xf32>
    %cst_30 = arith.constant dense<0.000000e+00> : vector<128xf32>
    %72 = vector.multi_reduction <add>, %71, %cst_30 [0] : vector<8x128xf32> to vector<128xf32>
    %73 = vector.shape_cast %72 : vector<128xf32> to vector<1x128xf32>
    %cst_31 = arith.constant 8.000000e+00 : f32
    %74 = vector.broadcast %cst_31 : f32 to vector<1x128xf32>
    %75 = arith.divf %73, %74 : vector<1x128xf32>
    %76 = vector.broadcast %75 : vector<1x128xf32> to vector<8x128xf32>
    %77 = arith.subf %71, %76 : vector<8x128xf32>
    %78 = arith.mulf %77, %77 : vector<8x128xf32>
    %cst_32 = arith.constant dense<0.000000e+00> : vector<128xf32>
    %79 = vector.multi_reduction <add>, %78, %cst_32 [0] : vector<8x128xf32> to vector<128xf32>
    %80 = vector.shape_cast %79 : vector<128xf32> to vector<1x128xf32>
    %cst_33 = arith.constant 8.000000e+00 : f32
    %81 = vector.broadcast %cst_33 : f32 to vector<1x128xf32>
    %82 = arith.divf %80, %81 : vector<1x128xf32>
    %cst_34 = arith.constant 9.99999974E-6 : f32
    %83 = vector.broadcast %cst_34 : f32 to vector<1x128xf32>
    %84 = arith.addf %82, %83 : vector<1x128xf32>
    %85 = math.rsqrt %84 : vector<1x128xf32>
    %86 = arith.mulf %64, %85 : vector<1x128xf32>
    %87 = vector.broadcast %86 : vector<1x128xf32> to vector<8x128xf32>
    %88 = arith.mulf %77, %87 : vector<8x128xf32>
    %89 = vector.broadcast %65 : vector<1x128xf32> to vector<8x128xf32>
    %90 = arith.addf %88, %89 : vector<8x128xf32>
    %c384 = arith.constant 384 : index
    %c0_35 = arith.constant 0 : index
    %91 = vector.load %arg1[%c384, %c0_35] : memref<512x128xbf16, #tpu.memory_space<vmem>>, vector<128x128xbf16>
    %92 = arith.truncf %90 : vector<8x128xf32> to vector<8x128xbf16>
    %cst_36 = arith.constant dense<0.000000e+00> : vector<8x128xf32>
    %93 = tpu.matmul %92, %91, %cst_36 {dimension_numbers = #tpu.dot_dimension_numbers<[1], [0], [0], [1], [0, 0, 1, 1], [], []>} : vector<8x128xbf16>, vector<128x128xbf16>, vector<8x128xf32> -> vector<8x128xf32>
    %c9 = arith.constant 9 : index
    %c0_37 = arith.constant 0 : index
    %94 = vector.load %arg2[%c9, %c0_37] : memref<16x128xf32, #tpu.memory_space<vmem>>, vector<1x128xf32>
    %95 = vector.broadcast %94 : vector<1x128xf32> to vector<8x128xf32>
    %96 = arith.addf %93, %95 : vector<8x128xf32>
    %cst_38 = arith.constant 0.00999999977 : f32
    %97 = vector.broadcast %cst_38 : f32 to vector<8x128xf32>
    %98 = arith.mulf %97, %96 : vector<8x128xf32>
    %99 = arith.maximumf %96, %98 : vector<8x128xf32>
    %c0_39 = arith.constant 0 : index
    %c0_40 = arith.constant 0 : index
    %100 = vector.load %arg3[%c0_39, %c0_40] : memref<8x128xf32, #tpu.memory_space<vmem>>, vector<8x128xf32>
    tpu.vector_store %arg3[%c0_39, %c0_40], %99 {strides = array<i32>} : memref<8x128xf32, #tpu.memory_space<vmem>>, vector<8x128xf32>,
    return
  }
}

</mosaic_0001>

<bundles_post_ra>
// kernel: ff_attention_forward.1
= control target key start
LH: loop header
LB: loop body
LE: loop exit
PB: predicated region body
PF: predicated region fallthrough
CT: control target
= control target key end

     0   :  { %8 = vsyncpa [#allocation3], 0  ;;  %s679_s15 = smov [#allocation2]   ;;  %s680_s17 = smov 64   ;;  %s750_s0 = inlined_call_operand.vmem [shape: f32[8,128], index: 0, kind: input, shape index: {}]   ;;  %s751_s1 = inlined_call_operand.hbm [shape: bf16[512,128], index: 1, kind: input, shape index: {}]   ;;  %s752_s2 = inlined_call_operand.vmem [shape: f32[16,128], index: 2, kind: input, shape index: {}]   ;;  %s753_s3 = inlined_call_operand.vmem [shape: f32[8,128], index: 3, kind: output, shape index: {}]  }
   0x1   :  { %s15_s14 = sshll.u32 %s751_s1, 4  ;;  %s17_s16 = sshll.u32 %s679_s15, 4  ;;  %s16_s14 = int_to_ptr.hbm [resolvable:$true] %s15_s14  ;;  %s18_s16 = int_to_ptr.vmem [resolvable:$true] %s17_s16 }
   0x2   :  { %s681_s18 = smov 4  }
   0x3   :  { %23 = dma.hbm_to_vmem [thread:$0]  %s16_s14, 4096, %s18_s16, [#allocation3], %s680_s17, %s680_s17, %s681_s18  }
   0x4   :  { %677 = dma.done.wait [#allocation3], 4096  }
   0x5   :  { %678 = vsyncadd [#allocation3], 4294963200  ;;  %v609_v0 = vld [vmem:[#allocation2 + $0x38] sm:$0xff]  ;;  %v608_v1 = vld [vmem:[#allocation2 + $0x30] sm:$0xff]  ;;  %v682_v13 = vmov 8.0  }
   0x6   :  { %100 = vmatpush.bf16.msra.mxu0 %v609_v0  ;;  %v607_v2 = vld [vmem:[#allocation2 + $0x28] sm:$0xff]  ;;  %v606_v3 = vld [vmem:[#allocation2 + $0x20] sm:$0xff]  ;;  %v605_v4 = vld [vmem:[#allocation2 + $0x18] sm:$0xff]  ;;  %645 = vrcp.f32 %v682_v13 }
   0x7   :  { %v604_v5 = vld [vmem:[#allocation2 + $0x10] sm:$0xff]  ;;  %v603_v6 = vld [vmem:[#allocation2 + $0x8] sm:$0xff]  ;;  %v602_v7 = vld [vmem:[#allocation2] sm:$0xff] }
   0x8   :  { %v30_v8 = vld [vmem:[%s750_s0] sm:$0xff]  ;;  %v617_v10 = vld [vmem:[#allocation2 + $0x78] sm:$0xff]  ;;  %v616_v11 = vld [vmem:[#allocation2 + $0x70] sm:$0xff] }
   0x9   :  { %v31_v9 = vpack.c.bf16 %v30_v8, %v30_v8  ;;  %223 = vmatpush.bf16.msra.mxu1 %v617_v10  ;;  %v615_v12 = vld [vmem:[#allocation2 + $0x68] sm:$0xff]  ;;  %v614_v14 = vld [vmem:[#allocation2 + $0x60] sm:$0xff]  ;;  %v613_v17 = vld [vmem:[#allocation2 + $0x58] sm:$0xff] }
   0xa   :  { %101 = vmatpush.bf16.msra.mxu0 %v608_v1  ;;  %v638_v16 = vld [vmem:[%s752_s2] ss:$0 sm:$0xff]  ;;  %v612_v21 = vld [vmem:[#allocation2 + $0x50] sm:$0xff]  ;;  %v611_v25 = vld [vmem:[#allocation2 + $0x48] sm:$0xff] }
   0xb   :  { %v610_v30 = vld [vmem:[#allocation2 + $0x40] sm:$0xff]  ;;  %v625_v62 = vld [vmem:[#allocation2 + $0xb8] sm:$0xff]  ;;  %v624_v63 = vld [vmem:[#allocation2 + $0xb0] sm:$0xff] }
   0xc   :  { %v646_v15 = vpop.eup %645  ;;  %v49_v53 = vld [vmem:[%s752_s2 + $0x1] sm:$0x1]  ;;  %v639_v58 = vld [vmem:[%s752_s2 + $0x2] ss:$0 sm:$0xff]  ;;  %339 = vmatpush.bf16.msra.mxu2 %v625_v62  ;;  %v623_v0 = vld [vmem:[#allocation2 + $0xa8] sm:$0xff] }
   0xd   :  { %224 = vmatpush.bf16.msra.mxu1 %v616_v11  ;;  %v122_v19 = vmul.f32 8.0, %v646_v15  ;;  %vm126_vm0 = vweird.f32 %v646_v15  ;;  %v622_v1 = vld [vmem:[#allocation2 + $0xa0] sm:$0xff] }
   0xe   :  { %102 = vmatpush.bf16.msra.mxu0 %v607_v2  ;;  %v640_v2 = vld [vmem:[%s752_s2 + $0x3] ss:$0 sm:$0xff] }
   0xf   :  { %v123_v23 = vsub.f32 1.0, %v122_v19  ;;  %v618_v13 = vld [vmem:[#allocation2 + $0x80] sm:$0xff] }
  0x10   :  { %340 = vmatpush.bf16.msra.mxu2 %v624_v63 }
  0x11   :  { %225 = vmatpush.bf16.msra.mxu1 %v615_v12  ;;  %v124_v28 = vmul.f32 %v646_v15, %v123_v23 }
  0x12   :  { %103 = vmatpush.bf16.msra.mxu0 %v606_v3  ;;  %v621_v3 = vld [vmem:[#allocation2 + $0x98] sm:$0xff] }
  0x13   :  { %v125_v32 = vadd.f32 %v646_v15, %v124_v28 }
  0x14   :  { %341 = vmatpush.bf16.msra.mxu2 %v623_v0 }
  0x15   :  { %226 = vmatpush.bf16.msra.mxu1 %v614_v14  ;;  %v712_v35 = vsel %vm126_vm0, %v646_v15, %v125_v32 }
  0x16   :  { %104 = vmatpush.bf16.msra.mxu0 %v605_v4 }
  0x18   :  { %342 = vmatpush.bf16.msra.mxu2 %v622_v1 }
  0x19   :  { %227 = vmatpush.bf16.msra.mxu1 %v613_v17 }
  0x1a   :  { %105 = vmatpush.bf16.msra.mxu0 %v604_v5 }
  0x1c   :  { %343 = vmatpush.bf16.msra.mxu2 %v621_v3 }
  0x1d   :  { %228 = vmatpush.bf16.msra.mxu1 %v612_v21 }
  0x1e   :  { %106 = vmatpush.bf16.msra.mxu0 %v603_v6  ;;  %v620_v6 = vld [vmem:[#allocation2 + $0x90] sm:$0xff] }
  0x20   :  { %344 = vmatpush.bf16.msra.mxu2 %v620_v6 }
  0x21   :  { %229 = vmatpush.bf16.msra.mxu1 %v611_v25 }
  0x22   :  { %107 = vmatpush.bf16.msra.mxu0 %v602_v7 }
  0x25   :  { %108 = vmatmul.bf16.vlgmr.msra.gmra.mxu0 %v31_v9  ;;  %230 = vmatpush.bf16.msra.mxu1 %v610_v30  ;;  %v619_v9 = vld [vmem:[#allocation2 + $0x88] sm:$0xff] }
  0x26   :  { %345 = vmatpush.bf16.msra.mxu2 %v619_v9 }
  0x2a   :  { %346 = vmatpush.bf16.msra.mxu2 %v618_v13 }
  0xa2   :  { %v109_v18 = vpop.f32.mrf.mxu0 }
  0xa3   :  { %v110_v20 = vadd.f32 %v638_v16, %v109_v18 }
  0xa5   :  { %v113_v22 = vmul.f32 0.01, %v110_v20 }
  0xa7   :  { %v114_v24 = vmax.f32 %v110_v20, %v113_v22 }
  0xa9   :  { %v115_v26 = vrot.slane %v114_v24, 4 }
  0xaa   :  { %v111_v27 = vpop.f32.mrf.mxu0 }
  0xab   :  { %v116_v29 = vadd.f32 %v115_v26, %v114_v24 }
  0xad   :  { %v117_v31 = vrot.slane %v116_v29, 2 }
  0xaf   :  { %v118_v33 = vadd.f32 %v117_v31, %v116_v29 }
  0xb1   :  { %v119_v34 = vrot.slane %v118_v33, 1 }
  0xb3   :  { %v120_v36 = vadd.f32 %v119_v34, %v118_v33  ;;  %v172_v34 = vld [vmem:[%s752_s2 + $0x4] sm:$0x1] }
  0xb5   :  { %v128_v37 = vmul.f32 %v712_v35, %v120_v36 }
  0xb7   :  { %v129_v38 = vsub.f32 %v114_v24, %v128_v37 }
  0xb9   :  { %v130_v39 = vmul.f32 %v129_v38, %v129_v38 }
  0xbb   :  { %v131_v40 = vrot.slane %v130_v39, 4 }
  0xbd   :  { %v132_v41 = vadd.f32 %v131_v40, %v130_v39  ;;  %v641_v40 = vld [vmem:[%s752_s2 + $0x5] ss:$0 sm:$0xff] }
  0xbf   :  { %v133_v42 = vrot.slane %v132_v41, 2 }
  0xc1   :  { %v134_v43 = vadd.f32 %v133_v42, %v132_v41 }
  0xc3   :  { %v135_v44 = vrot.slane %v134_v43, 1 }
  0xc5   :  { %v136_v45 = vadd.f32 %v135_v44, %v134_v43  ;;  %v633_v44 = vld [vmem:[#allocation2 + $0xf8] sm:$0xff] }
  0xc6   :  { %453 = vmatpush.bf16.msra.mxu3 %v633_v44 }
  0xc7   :  { %v137_v46 = vmul.f32 %v136_v45, %v712_v35  ;;  %v632_v45 = vld [vmem:[#allocation2 + $0xf0] sm:$0xff] }
  0xc9   :  { %v138_v47 = vadd.f32 1e-05, %v137_v46  ;;  %v631_v46 = vld [vmem:[#allocation2 + $0xe8] sm:$0xff] }
  0xca   :  { %454 = vmatpush.bf16.msra.mxu3 %v632_v45 }
  0xcb   :  { %647 = vrsqrt.f32 %v138_v47  ;;  %vm145_vm2 = vweird.f32 %v138_v47 }
  0xce   :  { %455 = vmatpush.bf16.msra.mxu3 %v631_v46 }
  0xd1   :  { %v648_v48 = vpop.eup %647 }
  0xd2   :  { %v140_v49 = vmul.f32 %v648_v48, %v138_v47  ;;  %vm146_vm1 = vweird.f32 %v648_v48  ;;  %v630_v47 = vld [vmem:[#allocation2 + $0xe0] sm:$0xff] }
  0xd3   :  { %vm147_vm3 = vmor %vm145_vm2, %vm146_vm1  ;;  %456 = vmatpush.bf16.msra.mxu3 %v630_v47 }
  0xd4   :  { %v141_v50 = vmul.f32 %v648_v48, %v140_v49  ;;  %v629_v49 = vld [vmem:[#allocation2 + $0xd8] sm:$0xff] }
  0xd6   :  { %v142_v51 = vmul.f32 0.5, %v141_v50 }
  0xd7   :  { %457 = vmatpush.bf16.msra.mxu3 %v629_v49 }
  0xd8   :  { %v143_v52 = vsub.f32 1.5, %v142_v51 }
  0xda   :  { %v144_v54 = vmul.f32 %v648_v48, %v143_v52  ;;  %v628_v52 = vld [vmem:[#allocation2 + $0xd0] sm:$0xff] }
  0xdb   :  { %458 = vmatpush.bf16.msra.mxu3 %v628_v52 }
  0xdc   :  { %v148_v55 = vsel %vm147_vm3, %v648_v48, %v144_v54  ;;  %v642_v48 = vld [vmem:[%s752_s2 + $0x6] ss:$0 sm:$0xff] }
  0xdd   :  { %v149_v56 = vmul.f32 %v148_v55, %v49_v53  ;;  %v627_v55 = vld [vmem:[#allocation2 + $0xc8] sm:$0xff] }
  0xdf   :  { %v150_v57 = vperm.slane %v149_v56, 0  ;;  %459 = vmatpush.bf16.msra.mxu3 %v627_v55 }
  0xe1   :  { %v151_v59 = vmul.f32 %v150_v57, %v129_v38 }
  0xe3   :  { %v153_v60 = vadd.f32 %v639_v58, %v151_v59  ;;  %v626_v59 = vld [vmem:[#allocation2 + $0xc0] sm:$0xff] }
  0xe4   :  { %460 = vmatpush.bf16.msra.mxu3 %v626_v59 }
  0xe5   :  { %v154_v61 = vpack.c.bf16 %v153_v60, %v153_v60 }
  0xe7   :  { %231 = vmatmul.bf16.vlgmr.msra.gmra.mxu1 %v154_v61 }
 0x164   :  { %v232_v4 = vpop.f32.mrf.mxu1 }
 0x165   :  { %v233_v5 = vadd.f32 %v640_v2, %v232_v4 }
 0x167   :  { %v236_v7 = vmul.f32 0.01, %v233_v5 }
 0x169   :  { %v237_v8 = vmax.f32 %v233_v5, %v236_v7 }
 0x16b   :  { %v238_v10 = vrot.slane %v237_v8, 4 }
 0x16c   :  { %v234_v11 = vpop.f32.mrf.mxu1 }
 0x16d   :  { %v239_v12 = vadd.f32 %v238_v10, %v237_v8 }
 0x16f   :  { %v240_v14 = vrot.slane %v239_v12, 2 }
 0x171   :  { %v241_v15 = vadd.f32 %v240_v14, %v239_v12 }
 0x173   :  { %v242_v16 = vrot.slane %v241_v15, 1 }
 0x175   :  { %v243_v17 = vadd.f32 %v242_v16, %v241_v15  ;;  %v288_v16 = vld [vmem:[%s752_s2 + $0x7] sm:$0x1] }
 0x177   :  { %v244_v18 = vmul.f32 %v243_v17, %v712_v35 }
 0x179   :  { %v245_v19 = vsub.f32 %v237_v8, %v244_v18 }
 0x17b   :  { %v246_v20 = vmul.f32 %v245_v19, %v245_v19 }
 0x17d   :  { %v247_v21 = vrot.slane %v246_v20, 4 }
 0x17f   :  { %v248_v22 = vadd.f32 %v247_v21, %v246_v20 }
 0x181   :  { %v249_v23 = vrot.slane %v248_v22, 2 }
 0x183   :  { %v250_v24 = vadd.f32 %v249_v23, %v248_v22 }
 0x185   :  { %v251_v25 = vrot.slane %v250_v24, 1 }
 0x187   :  { %v252_v26 = vadd.f32 %v251_v25, %v250_v24  ;;  %v644_v24 = vld [vmem:[%s752_s2 + $0x9] ss:$0 sm:$0xff] }
 0x189   :  { %v253_v27 = vmul.f32 %v252_v26, %v712_v35 }
 0x18b   :  { %v254_v28 = vadd.f32 1e-05, %v253_v27 }
 0x18d   :  { %649 = vrsqrt.f32 %v254_v28  ;;  %vm261_vm5 = vweird.f32 %v254_v28 }
 0x193   :  { %v650_v29 = vpop.eup %649 }
 0x194   :  { %v256_v30 = vmul.f32 %v650_v29, %v254_v28  ;;  %vm262_vm4 = vweird.f32 %v650_v29 }
 0x195   :  { %vm263_vm6 = vmor %vm261_vm5, %vm262_vm4 }
 0x196   :  { %v257_v31 = vmul.f32 %v650_v29, %v256_v30 }
 0x198   :  { %v258_v32 = vmul.f32 0.5, %v257_v31 }
 0x19a   :  { %v259_v33 = vsub.f32 1.5, %v258_v32 }
 0x19c   :  { %v260_v36 = vmul.f32 %v650_v29, %v259_v33 }
 0x19e   :  { %v264_v37 = vsel %vm263_vm6, %v650_v29, %v260_v36 }
 0x19f   :  { %v265_v38 = vmul.f32 %v264_v37, %v172_v34 }
 0x1a1   :  { %v266_v39 = vperm.slane %v265_v38, 0 }
 0x1a3   :  { %v267_v41 = vmul.f32 %v266_v39, %v245_v19 }
 0x1a5   :  { %v269_v42 = vadd.f32 %v641_v40, %v267_v41 }
 0x1a7   :  { %v270_v43 = vpack.c.bf16 %v269_v42, %v269_v42 }
 0x1a9   :  { %347 = vmatmul.bf16.vlgmr.msra.gmra.mxu2 %v270_v43 }
 0x22c   :  { %v348_v50 = vpop.f32.mrf.mxu2 }
 0x22d   :  { %v349_v51 = vadd.f32 %v642_v48, %v348_v50 }
 0x22f   :  { %v352_v53 = vmul.f32 0.01, %v349_v51 }
 0x231   :  { %v353_v54 = vmax.f32 %v349_v51, %v352_v53 }
 0x233   :  { %v354_v56 = vrot.slane %v353_v54, 4 }
 0x234   :  { %v350_v57 = vpop.f32.mrf.mxu2 }
 0x235   :  { %v355_v58 = vadd.f32 %v354_v56, %v353_v54 }
 0x237   :  { %v356_v60 = vrot.slane %v355_v58, 2 }
 0x239   :  { %v357_v61 = vadd.f32 %v356_v60, %v355_v58 }
 0x23b   :  { %v358_v62 = vrot.slane %v357_v61, 1 }
 0x23d   :  { %v359_v63 = vadd.f32 %v358_v62, %v357_v61 }
 0x23f   :  { %v360_v0 = vmul.f32 %v359_v63, %v712_v35 }
 0x241   :  { %v361_v1 = vsub.f32 %v353_v54, %v360_v0 }
 0x243   :  { %v362_v2 = vmul.f32 %v361_v1, %v361_v1 }
 0x245   :  { %v363_v3 = vrot.slane %v362_v2, 4 }
 0x247   :  { %v364_v4 = vadd.f32 %v363_v3, %v362_v2 }
 0x249   :  { %v365_v5 = vrot.slane %v364_v4, 2 }
 0x24b   :  { %v366_v6 = vadd.f32 %v365_v5, %v364_v4 }
 0x24d   :  { %v367_v7 = vrot.slane %v366_v6, 1 }
 0x24f   :  { %v368_v8 = vadd.f32 %v367_v7, %v366_v6 }
 0x251   :  { %v369_v9 = vmul.f32 %v368_v8, %v712_v35  ;;  %v643_v35 = vld [vmem:[%s752_s2 + $0x8] ss:$0 sm:$0xff] }
 0x253   :  { %v370_v10 = vadd.f32 1e-05, %v369_v9 }
 0x255   :  { %651 = vrsqrt.f32 %v370_v10  ;;  %vm377_vm8 = vweird.f32 %v370_v10 }
 0x25b   :  { %v652_v11 = vpop.eup %651 }
 0x25c   :  { %v372_v12 = vmul.f32 %v652_v11, %v370_v10  ;;  %vm378_vm7 = vweird.f32 %v652_v11 }
 0x25d   :  { %vm379_vm9 = vmor %vm377_vm8, %vm378_vm7 }
 0x25e   :  { %v373_v13 = vmul.f32 %v652_v11, %v372_v12 }
 0x260   :  { %v374_v14 = vmul.f32 0.5, %v373_v13 }
 0x262   :  { %v375_v15 = vsub.f32 1.5, %v374_v14 }
 0x264   :  { %v376_v17 = vmul.f32 %v652_v11, %v375_v15 }
 0x266   :  { %v380_v18 = vsel %vm379_vm9, %v652_v11, %v376_v17 }
 0x267   :  { %v381_v19 = vmul.f32 %v380_v18, %v288_v16 }
 0x269   :  { %v382_v20 = vperm.slane %v381_v19, 0 }
 0x26b   :  { %v383_v21 = vmul.f32 %v382_v20, %v361_v1 }
 0x26d   :  { %v385_v22 = vadd.f32 %v643_v35, %v383_v21 }
 0x26f   :  { %v402_v23 = vpack.c.bf16 %v385_v22, %v385_v22 }
 0x271   :  { %461 = vmatmul.bf16.vlgmr.msra.gmra.mxu3 %v402_v23 }
 0x2f4   :  { %v462_v25 = vpop.f32.mrf.mxu3 }
 0x2f5   :  { %v463_v26 = vadd.f32 %v644_v24, %v462_v25 }
 0x2f7   :  { %v466_v27 = vmul.f32 0.01, %v463_v26 }
 0x2f9   :  { %v467_v28 = vmax.f32 %v463_v26, %v466_v27 }
 0x2fb   :  { %468 = vst [vmem:[%s753_s3] sm:$0xff] %v467_v28 }
 0x2fc   :  { %v464_v29 = vpop.f32.mrf.mxu3 }
 0x2fd   :  { %473 = vsyncpa [#allocation3], 1 }

</bundles_post_ra>
